<compile_context>
chip_gen: v7x
topology: tpu7x:2x2x1
jax: 0.10.0
libtpu: 0.0.40
codegen_flags: <defaults>
</compile_context>

<pallas_src>
import jax
import jax.numpy as jnp
from jax.experimental import pallas as pl
from jax.experimental.pallas import tpu as pltpu


# ----------------------------- Pallas kernel ------------------------------ #

def _fusion_kernel(x_ref, ctxk_ref, wa_ref, ca_ref, wv_ref, bv_ref, out_ref):
    """One (batch, query-tile) grid step.

    x_ref    : (1, C, tq)  features, channels on sublanes, tokens on lanes
    ctxk_ref : (1, N, 1)   context value of every key token
    wa_ref   : (1, C)      scale * (Wq^T wk)   — collapsed attention-logit weights
    ca_ref   : (1, 1)      scale * (bq·wk)
    wv_ref   : (C, 1)      value-projection weight (context has 1 channel)
    bv_ref   : (C, 1)      value-projection bias
    out_ref  : (1, C, tq)
    """
    x = x_ref[0]                       # (C, tq) f32
    ctx_k = ctxk_ref[0]                # (N, 1)  key-token context values

    # Per-query attention-logit coefficient — the only MXU work left.
    a = jnp.dot(wa_ref[...], x, preferred_element_type=jnp.float32) + ca_ref[...]  # (1, tq)

    # scores^T (keys on sublanes, queries on lanes) — pure broadcast, no matmul.
    z = ctx_k * a                                       # (N, tq)
    z = z - jnp.max(z, axis=0, keepdims=True)           # stable softmax
    p = jnp.exp(z)                                      # unnormalised probs
    denom = jnp.sum(p, axis=0, keepdims=True)           # (1, tq)
    num = jnp.sum(p * ctx_k, axis=0, keepdims=True)     # (1, tq)  Σ_j p̃_ij ctx_j
    pooled = num * pl.reciprocal(denom, approx=True)    # softmax-weighted context

    # out = attn @ v + x  ==  pooled ⊗ wv + bv + x   (softmax rows sum to 1)
    out_ref[0] = (x + wv_ref[...] * pooled + bv_ref[...]).astype(out_ref.dtype)


def cross_attention_fusion(x, ctx, params):
    """CrossAttentionFusion.forward.  x: (B,C,T,H,W), ctx: (B,1,T,H,W)."""
    wq, bq, wk, bk, wv, bv = params          # weights stored as (C_in, C_out)
    del bk                                   # exact: bk cancels in the softmax
    B, C, T, H, W = x.shape
    N = T * H * W
    C_out = wq.shape[1]
    scale = 1.0 / float(C_out) ** 0.5

    # Rank-1 collapse of the query/key projections (tiny wrapper-side matvec).
    wa = ((wq @ wk[0]) * scale).reshape(1, C)            # (1, C_in)
    ca = (jnp.dot(bq[0], wk[0]) * scale).reshape(1, 1)   # (1, 1)
    wv_c = wv[0].reshape(C_out, 1)
    bv_c = bv[0].reshape(C_out, 1)

    # Native channel-major layout: only free reshapes, no HBM transposes.
    x_cn = x.reshape(B, C, N)
    ctx_k = ctx.reshape(B, N, 1)

    tq = 128 if (N % 128 == 0) else N        # query tile along the lane axis
    nq = N // tq

    out = pl.pallas_call(
        _fusion_kernel,
        out_shape=jax.ShapeDtypeStruct((B, C_out, N), jnp.float32),
        grid_spec=pltpu.PrefetchScalarGridSpec(
            num_scalar_prefetch=0,
            grid=(B, nq),
            in_specs=[
                pl.BlockSpec((1, C, tq), lambda b, q: (b, 0, q)),     # x tile
                pl.BlockSpec((1, N, 1), lambda b, q: (b, 0, 0)),      # key ctx
                pl.BlockSpec((1, C), lambda b, q: (0, 0)),            # wa
                pl.BlockSpec((1, 1), lambda b, q: (0, 0)),            # ca
                pl.BlockSpec((C_out, 1), lambda b, q: (0, 0)),        # wv
                pl.BlockSpec((C_out, 1), lambda b, q: (0, 0)),        # bv
            ],
            out_specs=pl.BlockSpec((1, C_out, tq), lambda b, q: (b, 0, q)),
        ),
        compiler_params=pltpu.CompilerParams(
            dimension_semantics=("parallel", "parallel"),
        ),
    )(x_cn, ctx_k, wa, ca, wv_c, bv_c)
    return out.reshape(B, C_out, T, H, W)


# ---------------------- deterministic parameter init ---------------------- #

def init_fusion_params(key, dim_q, dim_kv, dim_out):
    # Weights stored as (C_in, C_out): transpose of PyTorch Conv3d (C_out, C_in, 1,1,1).
    ks = jax.random.split(key, 6)
    bq = 1.0 / dim_q ** 0.5
    bkv = 1.0 / dim_kv ** 0.5
    return (
        jax.random.uniform(ks[0], (dim_q, dim_out), jnp.float32, -bq, bq),
        jax.random.uniform(ks[1], (1, dim_out), jnp.float32, -bq, bq),
        jax.random.uniform(ks[2], (dim_kv, dim_out), jnp.float32, -bkv, bkv),
        jax.random.uniform(ks[3], (1, dim_out), jnp.float32, -bkv, bkv),
        jax.random.uniform(ks[4], (dim_kv, dim_out), jnp.float32, -bkv, bkv),
        jax.random.uniform(ks[5], (1, dim_out), jnp.float32, -bkv, bkv),
    )


def init_stage_params(key, c_in, c_out):
    k1, k2 = jax.random.split(key)
    bound = 1.0 / c_in ** 0.5
    w = jax.random.uniform(k1, (c_in, c_out), jnp.float32, -bound, bound)
    b = jax.random.uniform(k2, (1, c_out), jnp.float32, -bound, bound)
    return (w, b)


# ---------------------- stand-in backbone (plain JAX) ---------------------- #

def _avg_pool_spatial(x, s):
    if s == 1:
        return x
    B, C, T, H, W = x.shape
    return x.reshape(B, C, T, H // s, s, W // s, s).mean(axis=(4, 6))


def standin_stage(x, params, spatial_stride):
    # TODO(synk): the pretrained slow_r50 residual stage (torch.hub checkpoint)
    # has no in-script equivalent; this deterministic stand-in keeps the
    # channel / stride progression so the fusion kernels see the real shapes.
    w, b = params
    x = _avg_pool_spatial(x, spatial_stride)
    y = jnp.einsum('bcthw,cd->bdthw', x, w) + b[0][None, :, None, None, None]
    return jax.nn.relu(y)


def head(x, params):
    w, b = params
    pooled = x.mean(axis=(2, 3, 4))       # global average pool over (T, H, W)
    return pooled @ w + b[0]


FUSION_DIMS = [64, 256, 512, 1024, 2048]
STAGE_SPEC = [(3, 64, 4), (64, 256, 1), (256, 512, 2), (512, 1024, 2), (1024, 2048, 2)]


def init_model_params(key, num_classes=3):
    keys = jax.random.split(key, 11)
    stage_params = [init_stage_params(keys[i], cin, cout)
                    for i, (cin, cout, _) in enumerate(STAGE_SPEC)]
    fusion_params = [init_fusion_params(keys[5 + i], d, 1, d)
                     for i, d in enumerate(FUSION_DIMS)]
    head_params = init_stage_params(keys[10], 2048, num_classes)
    return stage_params, fusion_params, head_params


def forward(video, attn_map, params):
    """CrossAttentionRes3DCNN.forward: video (B,3,T,H,W), attn_map (B,1,T,H,W)."""
    stage_params, fusion_params, head_params = params
    x = video
    for i in range(5):
        _, _, stride = STAGE_SPEC[i]
        x = standin_stage(x, stage_params[i], stride)
        ctx = jax.image.resize(attn_map, attn_map.shape[:2] + x.shape[2:],
                               method='trilinear', antialias=False)
        x = cross_attention_fusion(x, ctx, fusion_params[i])
    return head(x, head_params)


# ------------------------- pure-JAX fusion reference ----------------------- #
# Full (un-collapsed) computation — used to assert that the rank-1 rewrite is
# exact, as requested in the performance review.

def fusion_ref(x, ctx, params):
    wq, bq, wk, bk, wv, bv = params
    B, C, T, H, W = x.shape
    N = T * H * W
    xt = x.reshape(B, C, N).transpose(0, 2, 1)
    ct = ctx.reshape(B, 1, N).transpose(0, 2, 1)
    q = xt @ wq + bq
    k = ct @ wk + bk
    v = ct @ wv + bv
    attn = jax.nn.softmax(jnp.einsum('bnc,bmc->bnm', q, k) / float(C) ** 0.5, -1)
    out = jnp.einsum('bnm,bmc->bnc', attn, v)
    return out.transpose(0, 2, 1).reshape(B, C, T, H, W) + x


# ---------------------------------- main ----------------------------------- #

if __name__ == "__main__":
    key = jax.random.PRNGKey(0)
    k_param, k_vid, k_attn, k_x2 = jax.random.split(key, 4)

    B, T, H, W = 2, 4, 32, 32
    video = jax.random.normal(k_vid, (B, 3, T, H, W), jnp.float32)
    attn_map = jax.random.uniform(k_attn, (B, 1, T, H, W), jnp.float32)
    params = init_model_params(k_param, num_classes=3)

    stage_params, fusion_params, _ = params

    # check 1: stage-0 shapes (C=64, N=256 -> tiled query axis) vs. full reference
    x0 = standin_stage(video, stage_params[0], STAGE_SPEC[0][2])
    ctx0 = jax.image.resize(attn_map, attn_map.shape[:2] + x0.shape[2:],
                            method='trilinear', antialias=False)
    got0 = cross_attention_fusion(x0, ctx0, fusion_params[0])
    want0 = fusion_ref(x0, ctx0, fusion_params[0])
    assert jnp.allclose(got0, want0, atol=1e-2, rtol=1e-2), \
        f"stage0 max abs err {float(jnp.max(jnp.abs(got0 - want0)))}"

    # check 2: wide-channel path (C=2048, small N, single query tile) vs. reference
    x4 = jax.random.normal(k_x2, (1, 2048, 2, 2, 2), jnp.float32)
    ctx4 = jax.random.uniform(k_x2, (1, 1, 2, 2, 2), jnp.float32)
    got4 = cross_attention_fusion(x4, ctx4, fusion_params[4])
    want4 = fusion_ref(x4, ctx4, fusion_params[4])
    assert jnp.allclose(got4, want4, atol=1e-2, rtol=1e-2), \
        f"stage4 max abs err {float(jnp.max(jnp.abs(got4 - want4)))}"

    logits = jax.jit(forward)(video, attn_map, params)
    jax.block_until_ready(logits)
    assert logits.shape == (B, 3)
    print("KERNEL_OK")
</pallas_src>

<mosaic_0001>
module attributes {stable_mosaic.version = 11 : i64} {
  func.func @_fusion_kernel(%arg0: i32, %arg1: i32, %arg2: memref<1x64x128xf32, #tpu.memory_space<vmem>>, %arg3: memref<1x256x1xf32, #tpu.memory_space<vmem>>, %arg4: memref<1x64xf32, #tpu.memory_space<vmem>>, %arg5: memref<1x1xf32, #tpu.memory_space<vmem>>, %arg6: memref<64x1xf32, #tpu.memory_space<vmem>>, %arg7: memref<64x1xf32, #tpu.memory_space<vmem>>, %arg8: memref<1x64x128xf32, #tpu.memory_space<vmem>>) attributes {dimension_semantics = [#tpu.dimension_semantics<parallel>, #tpu.dimension_semantics<parallel>], iteration_bounds = array<i64: 2, 2>, scalar_prefetch = 0 : i64, scratch_operands = 0 : i64, tpu.core_type = #tpu.core_type<tc>, window_params = [{transform_indices = @transform_0, window_bounds = array<i64: 1, 64, 128>}, {transform_indices = @transform_1, window_bounds = array<i64: 1, 256, 1>}, {pipeline_mode = #tpu.pipeline_mode<synchronous>, transform_indices = @transform_2, window_bounds = array<i64: 1, 64>}, {pipeline_mode = #tpu.pipeline_mode<synchronous>, transform_indices = @transform_3, window_bounds = array<i64: 1, 1>}, {pipeline_mode = #tpu.pipeline_mode<synchronous>, transform_indices = @transform_4, window_bounds = array<i64: 64, 1>}, {pipeline_mode = #tpu.pipeline_mode<synchronous>, transform_indices = @transform_5, window_bounds = array<i64: 64, 1>}, {transform_indices = @transform_6, window_bounds = array<i64: 1, 64, 128>}]} {
    %c0 = arith.constant 0 : index
    %c0_0 = arith.constant 0 : index
    %c0_1 = arith.constant 0 : index
    %0 = vector.load %arg2[%c0, %c0_0, %c0_1] : memref<1x64x128xf32, #tpu.memory_space<vmem>>, vector<1x64x128xf32>
    %1 = vector.shape_cast %0 : vector<1x64x128xf32> to vector<64x128xf32>
    %c0_2 = arith.constant 0 : index
    %c0_3 = arith.constant 0 : index
    %c0_4 = arith.constant 0 : index
    %2 = vector.load %arg3[%c0_2, %c0_3, %c0_4] : memref<1x256x1xf32, #tpu.memory_space<vmem>>, vector<1x256x1xf32>
    %3 = vector.shape_cast %2 : vector<1x256x1xf32> to vector<256x1xf32>
    %c0_5 = arith.constant 0 : index
    %c0_6 = arith.constant 0 : index
    %4 = vector.load %arg4[%c0_5, %c0_6] : memref<1x64xf32, #tpu.memory_space<vmem>>, vector<1x64xf32>
    %cst = arith.constant dense<0.000000e+00> : vector<1x128xf32>
    %5 = tpu.matmul %4, %1, %cst {dimension_numbers = #tpu.dot_dimension_numbers<[1], [0], [0], [1], [0, 0, 1, 1], [], []>} : vector<1x64xf32>, vector<64x128xf32>, vector<1x128xf32> -> vector<1x128xf32>
    %c0_7 = arith.constant 0 : index
    %c0_8 = arith.constant 0 : index
    %6 = vector.load %arg5[%c0_7, %c0_8] : memref<1x1xf32, #tpu.memory_space<vmem>>, vector<1x1xf32>
    %7 = vector.broadcast %6 : vector<1x1xf32> to vector<1x128xf32>
    %8 = arith.addf %5, %7 : vector<1x128xf32>
    %9 = vector.broadcast %3 : vector<256x1xf32> to vector<256x128xf32>
    %10 = vector.broadcast %8 : vector<1x128xf32> to vector<256x128xf32>
    %11 = arith.mulf %9, %10 : vector<256x128xf32>
    %cst_9 = arith.constant dense<0xFF800000> : vector<128xf32>
    %12 = vector.multi_reduction <maximumf>, %11, %cst_9 [0] : vector<256x128xf32> to vector<128xf32>
    %13 = vector.shape_cast %12 : vector<128xf32> to vector<1x128xf32>
    %14 = vector.broadcast %13 : vector<1x128xf32> to vector<256x128xf32>
    %15 = arith.subf %11, %14 : vector<256x128xf32>
    %16 = math.exp %15 : vector<256x128xf32>
    %cst_10 = arith.constant dense<0.000000e+00> : vector<128xf32>
    %17 = vector.multi_reduction <add>, %16, %cst_10 [0] : vector<256x128xf32> to vector<128xf32>
    %18 = vector.shape_cast %17 : vector<128xf32> to vector<1x128xf32>
    %19 = vector.broadcast %3 : vector<256x1xf32> to vector<256x128xf32>
    %20 = arith.mulf %16, %19 : vector<256x128xf32>
    %cst_11 = arith.constant dense<0.000000e+00> : vector<128xf32>
    %21 = vector.multi_reduction <add>, %20, %cst_11 [0] : vector<256x128xf32> to vector<128xf32>
    %22 = vector.shape_cast %21 : vector<128xf32> to vector<1x128xf32>
    %23 = tpu.reciprocal %18 {approx = true} : vector<1x128xf32> -> vector<1x128xf32>
    %24 = arith.mulf %22, %23 : vector<1x128xf32>
    %c0_12 = arith.constant 0 : index
    %c0_13 = arith.constant 0 : index
    %25 = vector.load %arg6[%c0_12, %c0_13] : memref<64x1xf32, #tpu.memory_space<vmem>>, vector<64x1xf32>
    %26 = vector.broadcast %25 : vector<64x1xf32> to vector<64x128xf32>
    %27 = vector.broadcast %24 : vector<1x128xf32> to vector<64x128xf32>
    %28 = arith.mulf %26, %27 : vector<64x128xf32>
    %29 = arith.addf %1, %28 : vector<64x128xf32>
    %c0_14 = arith.constant 0 : index
    %c0_15 = arith.constant 0 : index
    %30 = vector.load %arg7[%c0_14, %c0_15] : memref<64x1xf32, #tpu.memory_space<vmem>>, vector<64x1xf32>
    %31 = vector.broadcast %30 : vector<64x1xf32> to vector<64x128xf32>
    %32 = arith.addf %29, %31 : vector<64x128xf32>
    %c0_16 = arith.constant 0 : index
    %c0_17 = arith.constant 0 : index
    %c0_18 = arith.constant 0 : index
    %33 = vector.load %arg8[%c0_16, %c0_17, %c0_18] : memref<1x64x128xf32, #tpu.memory_space<vmem>>, vector<1x64x128xf32>
    %34 = vector.shape_cast %33 : vector<1x64x128xf32> to vector<64x128xf32>
    %35 = vector.shape_cast %32 : vector<64x128xf32> to vector<1x64x128xf32>
    tpu.vector_store %arg8[%c0_16, %c0_17, %c0_18], %35 {strides = array<i32>} : memref<1x64x128xf32, #tpu.memory_space<vmem>>, vector<1x64x128xf32>,
    return
  }
  func.func @transform_0(%arg0: i32, %arg1: i32) -> (i32, i32, i32) {
    %c0_i32 = arith.constant 0 : i32
    %c0_i32_0 = arith.constant 0 : i32
    return %arg0, %c0_i32, %arg1 : i32, i32, i32
  }
  func.func @transform_1(%arg0: i32, %arg1: i32) -> (i32, i32, i32) {
    %c0_i32 = arith.constant 0 : i32
    %c0_i32_0 = arith.constant 0 : i32
    %c0_i32_1 = arith.constant 0 : i32
    return %arg0, %c0_i32, %c0_i32_0 : i32, i32, i32
  }
  func.func @transform_2(%arg0: i32, %arg1: i32) -> (i32, i32) {
    %c0_i32 = arith.constant 0 : i32
    %c0_i32_0 = arith.constant 0 : i32
    %c0_i32_1 = arith.constant 0 : i32
    return %c0_i32, %c0_i32_0 : i32, i32
  }
  func.func @transform_3(%arg0: i32, %arg1: i32) -> (i32, i32) {
    %c0_i32 = arith.constant 0 : i32
    %c0_i32_0 = arith.constant 0 : i32
    %c0_i32_1 = arith.constant 0 : i32
    return %c0_i32, %c0_i32_0 : i32, i32
  }
  func.func @transform_4(%arg0: i32, %arg1: i32) -> (i32, i32) {
    %c0_i32 = arith.constant 0 : i32
    %c0_i32_0 = arith.constant 0 : i32
    %c0_i32_1 = arith.constant 0 : i32
    return %c0_i32, %c0_i32_0 : i32, i32
  }
  func.func @transform_5(%arg0: i32, %arg1: i32) -> (i32, i32) {
    %c0_i32 = arith.constant 0 : i32
    %c0_i32_0 = arith.constant 0 : i32
    %c0_i32_1 = arith.constant 0 : i32
    return %c0_i32, %c0_i32_0 : i32, i32
  }
  func.func @transform_6(%arg0: i32, %arg1: i32) -> (i32, i32, i32) {
    %c0_i32 = arith.constant 0 : i32
    %c0_i32_0 = arith.constant 0 : i32
    return %arg0, %c0_i32, %arg1 : i32, i32, i32
  }
}

</mosaic_0001>

<bundles_post_ra>
// kernel: tpu_custom_call.1
= control target key start
LH: loop header
LB: loop body
LE: loop exit
PB: predicated region body
PF: predicated region fallthrough
CT: control target
= control target key end

     0   :  { %s2110_s0 = inlined_call_operand.vmem [shape: f32[2,64,256], index: 0, kind: input, shape index: {}]   ;;  %s2111_s1 = inlined_call_operand.vmem [shape: f32[2,256,1], index: 1, kind: input, shape index: {}]   ;;  %s2112_s2 = inlined_call_operand.vmem [shape: f32[1,64], index: 2, kind: input, shape index: {}]   ;;  %s2113_s3 = inlined_call_operand.<no memory space> [shape: f32[1,1], index: 3, kind: input, shape index: {}]   ;;  %s2114_s4 = inlined_call_operand.vmem [shape: f32[64,1], index: 4, kind: input, shape index: {}]   ;;  %s2115_s5 = inlined_call_operand.vmem [shape: f32[64,1], index: 5, kind: input, shape index: {}]   ;;  %s2116_s6 = inlined_call_operand.hbm [shape: f32[2,64,256], index: 6, kind: output, shape index: {}]  }
   0x1   :  { %v11_v0 = vstv %s2113_s3 }
   0x2   :  { %12 = vst [vmem:[#allocation2] sm:$0x1] %v11_v0 }
   0x3   :  { %13 = vsyncpa [#allocation5], 0 }
   0x4   :  { %15 = vsyncpa [#allocation5 + $0x1], 0  ;;  %s1499_s23 = smov 0   ;;  %s1501_s24 = smov 0  }
   0x5   :  { %s1503_s25 = smov 0   ;;  %s1505_s26 = smov 0  }
   0x6   :  { %s1507_s27 = smov 0   ;;  %s1509_s28 = smov 0  }
   0x7   :  { %s1511_s29 = smov 0   ;;  %s1513_s30 = smov 0  }
   0x8 LB: > { %s1152_s3 = sadd.s32 4294967295, %s1451_s30   ;;  %s1153_s7 = sadd.s32 4294967294, %s1451_s30   ;;  %s1451_s30 = sphi %s1513_s30, %s21_s30   ;;  %s1447_s29 = sphi %s1511_s29, %s2208_s29   ;;  %s1443_s28 = sphi %s1509_s28, %s2207_s28   ;;  %s1439_s27 = sphi %s1507_s27, %s2206_s27   ;;  %s1435_s26 = sphi %s1505_s26, %s2205_s26   ;;  %s1431_s25 = sphi %s1503_s25, %s2204_s25   ;;  %s1427_s24 = sphi %s1501_s24, %s2203_s24   ;;  %s1423_s23 = sphi %s1499_s23, %s2202_s23  }
   0x9   : > { %s30_s8 = sadd.s32 1, %s1443_s28  ;;  %s33_s9 = sadd.s32 1, %s1447_s29 }
   0xa   : > { %p31_p0 = scmp.ge.s32.totalorder %s30_s8, 2  ;;  %p49_p1 = scmp.ne.s32.totalorder %s1431_s25, %s1427_s24 }
   0xb   : > { %p50_p2 = scmp.eq.s32.totalorder %s1451_s30, 0  ;;  %p191_p5 = scmp.eq.s32.totalorder %s1152_s3, 3 }
   0xc   : > { %s2210_s8 = smov (%p31_p0, %s30_s8), 0  ;;  %s2212_s9 = smov (!%p31_p0, %s33_s9), %s1447_s29 }
   0xd   : > { %s38_s10 = ssub.s32 %s1443_s28, %s2210_s8  ;;  %p1551_p3 = por %p50_p2, %p49_p1 }
   0xe   : > { %p35_p4 = scmp.ge.s32.totalorder %s2212_s9, 2  ;;  %p196_p6 = scmp.ne.s32.totalorder %s1427_s24, %s1423_s23 }
   0xf   : > { %p197_p7 = scmp.eq.s32.totalorder %s1153_s7, 3  ;;  %p1559_p8 = por %p191_p5, %p49_p1 }
  0x10   : > { %s2214_s9 = smov (%p35_p4, %s2212_s9), 0  ;;  %s42_s16 = sadd.s32 1, %s1431_s25 }
  0x11   : > { %p1563_p9 = por %p197_p7, %p196_p6  ;;  %s37_s14 = ssub.s32 %s1447_s29, %s2214_s9 }
  0x12   : > { %s39_s15 = sor.u32 %s38_s10, %s37_s14  ;;  %p1155_p11 = scmp.ge.s32.totalorder %s1451_s30, 4 }
  0x13   : > { %p40_p10 = scmp.eq.s32.totalorder %s39_s15, 0 }
  0x14   : > { %225 = sbr.rel (%p1155_p11) target bundleno = 37 (0x25), region = 32 }
  0x15   : > { %s1571_s17 = scalar_select %p40_p10, %s1431_s25, %s42_s16  }
  0x1b   : > { %228 = sbr.rel (!%p1551_p3) target bundleno = 37 (0x25), region = 36  ;;  %s230_s18 = sand.u32 (%p1551_p3), 1, %s1431_s25  }
  0x1c   : > { %s1157_s19 = sshll.u32 (%p1551_p3), %s1447_s29, 4  ;;  %s1156_s20 = sshll.u32 (%p1551_p3), %s230_s18, 6 }
  0x1d   : > { %s234_s21 = sadd.s32 (%p1551_p3), %s1443_s28, %s1157_s19  ;;  %s232_s14 = scalar_lea.vmem (%p1551_p3), [#allocation3], %s1156_s20 }
  0x1e   : > { %s1158_s22 = sshll.u32 (%p1551_p3), %s234_s21, 3 }
  0x1f   : > { %s236_s10 = scalar_lea.vmem (%p1551_p3), %s2110_s0, %s1158_s22 }
  0x20   : > { %v278_v1 = vld [vmem:[%s236_s10] sm:$0xff] (%p1551_p3)  ;;  %v280_v2 = vld [vmem:[%s236_s10 + $0x10] sm:$0xff] (%p1551_p3) }
  0x21   : > { %v282_v3 = vld [vmem:[%s236_s10 + $0x20] sm:$0xff] (%p1551_p3)  ;;  %279 = vst [vmem:[%s232_s14] sm:$0xff] (%p1551_p3), %v278_v1  ;;  %281 = vst [vmem:[%s232_s14 + $0x8] sm:$0xff] (%p1551_p3), %v280_v2  ;;  %v284_v4 = vld [vmem:[%s236_s10 + $0x30] sm:$0xff] (%p1551_p3) }
  0x22   : > { %283 = vst [vmem:[%s232_s14 + $0x10] sm:$0xff] %v282_v3  ;;  %v286_v5 = vld [vmem:[%s236_s10 + $0x40] sm:$0xff]  ;;  %v288_v6 = vld [vmem:[%s236_s10 + $0x50] sm:$0xff]  ;;  %285 = vst [vmem:[%s232_s14 + $0x18] sm:$0xff] %v284_v4 }
  0x23   : > { %287 = vst [vmem:[%s232_s14 + $0x20] sm:$0xff] %v286_v5  ;;  %289 = vst [vmem:[%s232_s14 + $0x28] sm:$0xff] %v288_v6  ;;  %v290_v7 = vld [vmem:[%s236_s10 + $0x60] sm:$0xff]  ;;  %v292_v8 = vld [vmem:[%s236_s10 + $0x70] sm:$0xff] }
  0x24   : > { %291 = vst [vmem:[%s232_s14 + $0x30] sm:$0xff] %v290_v7  ;;  %293 = vst [vmem:[%s232_s14 + $0x38] sm:$0xff] %v292_v8 }
  0x25 PF: > { %p1159_p12 = scmp.ge.s32.totalorder %s1451_s30, 1  ;;  %p306_p13 = scmp.lt.s32.totalorder %s1451_s30, 5 }
  0x27   : > { %p307_p0 = pnand %p1159_p12, %p306_p13 }
  0x29   : > { %310 = sbr.rel (%p307_p0) target bundleno = 447 (0x1bf), region = 78 }
  0x30   : > { %v393_v9 = vld [vmem:[#allocation2] sm:$0x1]  ;;  %s313_s11 = sand.u32 1, %s1427_s24   ;;  %v1453_v10 = vmov 0   ;;  %v1454_v11 = vmov 0.0|0.0   ;;  %p347_p1 = scmp.lt.s32.totalorder %s1439_s27, 1 }
  0x31   : > { %1289 = vset.pattern.permute.xlu0 %v1453_v10  ;;  %1199 = vmatprep.subr.bf16.mxu0 %v1454_v11  ;;  %s1587_s15 = sshll.u32 %s313_s11, 6  ;;  %vm1455_vm0 = vmmov 0   ;;  %v1456_v14 = vmov 0.0   ;;  %v392_v33 = vld [vmem:[%s2112_s2] sm:$0x1]  ;;  %vm403_vm1 = vcmask 523264  }
  0x32   : > { %396 = vperm.xlu0 %1289, %v393_v9   ;;  %1290 = vset.pattern.permute.xlu1 %v1453_v10  ;;  %s315_s16 = scalar_lea.vmem [#allocation3], %s1587_s15  ;;  %v914_v58 = vld [vmem:[%s2114_s4] sm:$0xff]  ;;  %v915_v59 = vld [vmem:[%s2114_s4 + $0x8] sm:$0xff]  ;;  %v916_v60 = vld [vmem:[%s2114_s4 + $0x10] sm:$0xff]  ;;  %s2058_s3 = scalar_lea.sflag [#allocation5], %s313_s11 }
  0x33   : > { %v1591_v12 = vld [vmem:[%s315_s16] sm:$0xff]  ;;  %v1593_v13 = vld [vmem:[%s315_s16 + $0x8] sm:$0xff]  ;;  %1196 = vmatprep.mubr.msk.f32.mxu0 %vm1455_vm0, %v1456_v14  ;;  %v1597_v16 = vld [vmem:[%s315_s16 + $0x10] sm:$0xff]  ;;  %s348_s18 = scalar_select %p347_p1, %s1439_s27, 1 }
  0x34   : > { %2147 = vst [vmem:[#allocation7_spill] sm:$0xff] %v1591_v12  ;;  %2148 = vst [vmem:[#allocation8_spill] sm:$0xff] %v1593_v13  ;;  %v1200_v15 = vpack.c.bf16 %v1593_v13, %v1591_v12  ;;  %v1599_v17 = vld [vmem:[%s315_s16 + $0x18] sm:$0xff]  ;;  %v1609_v19 = vld [vmem:[%s315_s16 + $0x20] sm:$0xff]  ;;  %s1457_s7 = smov [#allocation4]  }
  0x35   : > { %2149 = vst [vmem:[#allocation9_spill] sm:$0xff] %v1597_v16  ;;  %2150 = vst [vmem:[#allocation10_spill] sm:$0xff] %v1599_v17  ;;  %s1170_s19 = sshll.u32 %s348_s18, 8  ;;  %v1203_v18 = vpack.c.bf16 %v1599_v17, %v1597_v16  ;;  %v1611_v20 = vld [vmem:[%s315_s16 + $0x28] sm:$0xff]  ;;  %v1619_v26 = vld [vmem:[%s315_s16 + $0x30] sm:$0xff]  ;;  %s1361_s10 = sshll.u32 %s1457_s7, 4  ;;  %s1362_s10 = int_to_ptr.vmem [resolvable:$false] %s1361_s10 }
  0x36   : > { %1201 = vmatpush3.bf16.msra.mxu0 %v1200_v15  ;;  %s1607_s22 = scalar_lea.vmem %s2111_s1, %s1170_s19  ;;  %2151 = vst [vmem:[#allocation11_spill] sm:$0xff] %v1609_v19  ;;  %2152 = vst [vmem:[#allocation12_spill] sm:$0xff] %v1611_v20  ;;  %v1206_v25 = vpack.c.bf16 %v1611_v20, %v1609_v19  ;;  %v1621_v27 = vld [vmem:[%s315_s16 + $0x38] sm:$0xff]  ;;  %v919_v63 = vld [vmem:[%s2114_s4 + $0x28] sm:$0xff]  ;;  %s1166_s16 = sshll.u32 %s1439_s27, 4 }
  0x37   : > { %1202 = vmatprep.subr.bf16.mxu0 %v1454_v11  ;;  %v361_v21 = vld [vmem:[%s1607_s22 + $0x8] sm:$0xff]  ;;  %v360_v22 = vld [vmem:[%s1607_s22] sm:$0xff]  ;;  %v362_v23 = vld [vmem:[%s1607_s22 + $0x10] sm:$0xff]  ;;  %2153 = vst [vmem:[#allocation13_spill] sm:$0xff] %v1619_v26  ;;  %v1209_v30 = vpack.c.bf16 %v1621_v27, %v1619_v26  ;;  %s2026_s18 = sadd.s32 %s1435_s26, %s1166_s16  ;;  %s2029_s19 = scalar_lea.vmem [#allocation4], %s1587_s15 }
  0x38   : > { %484 = vperm.xlu1 %1290, %v361_v21   ;;  %479 = vperm.xlu0 %1289, %v360_v22   ;;  %v363_v24 = vld [vmem:[%s1607_s22 + $0x18] sm:$0xff]  ;;  %2154 = vst [vmem:[#allocation14_spill] sm:$0xff] %v1621_v27  ;;  %v364_v28 = vld [vmem:[%s1607_s22 + $0x20] sm:$0xff]  ;;  %v365_v29 = vld [vmem:[%s1607_s22 + $0x28] sm:$0xff]  ;;  %s1057_s20 = sshll.u32 %s2029_s19, 4  ;;  %s1167_s26 = sshll.u32 %s2026_s18, 7  ;;  %s2037_s20 = int_to_ptr.vmem [resolvable:$true] %s1057_s20 }
  0x39   : > { %v366_v31 = vld [vmem:[%s1607_s22 + $0x30] sm:$0xff]  ;;  %v367_v32 = vld [vmem:[%s1607_s22 + $0x38] sm:$0xff]  ;;  %v368_v34 = vld [vmem:[%s1607_s22 + $0x40] sm:$0xff]  ;;  %s2046_s21 = scalar_lea.hbm %s2116_s6, %s1167_s26  ;;  %s1363_s14 = scalar_lea.vmem %s1362_s10, 2048 }
  0x3a   : > { %1204 = vmatpush3.bf16.msra.mxu0 %v1203_v18  ;;  %v369_v35 = vld [vmem:[%s1607_s22 + $0x48] sm:$0xff]  ;;  %v370_v36 = vld [vmem:[%s1607_s22 + $0x50] sm:$0xff]  ;;  %v371_v37 = vld [vmem:[%s1607_s22 + $0x58] sm:$0xff]  ;;  %p1364_p5 = scmp.lt.s32.totalorder %s2037_s20, %s1362_s10 }
  0x3b   : > { %1205 = vmatprep.subr.bf16.mxu0 %v1454_v11  ;;  %v372_v38 = vld [vmem:[%s1607_s22 + $0x60] sm:$0xff]  ;;  %v373_v39 = vld [vmem:[%s1607_s22 + $0x68] sm:$0xff]  ;;  %v374_v40 = vld [vmem:[%s1607_s22 + $0x70] sm:$0xff] }
  0x3c   : > { %489 = vperm.xlu1 %1290, %v362_v23   ;;  %494 = vperm.xlu0 %1289, %v363_v24   ;;  %v375_v41 = vld [vmem:[%s1607_s22 + $0x78] sm:$0xff]  ;;  %v376_v42 = vld [vmem:[%s1607_s22 + $0x80] sm:$0xff]  ;;  %v377_v43 = vld [vmem:[%s1607_s22 + $0x88] sm:$0xff] }
  0x3d   : > { %v378_v44 = vld [vmem:[%s1607_s22 + $0x90] sm:$0xff]  ;;  %v379_v45 = vld [vmem:[%s1607_s22 + $0x98] sm:$0xff]  ;;  %v380_v46 = vld [vmem:[%s1607_s22 + $0xa0] sm:$0xff] }
  0x3e   : > { %1207 = vmatpush3.bf16.msra.mxu0 %v1206_v25  ;;  %v381_v47 = vld [vmem:[%s1607_s22 + $0xa8] sm:$0xff]  ;;  %v382_v48 = vld [vmem:[%s1607_s22 + $0xb0] sm:$0xff]  ;;  %v383_v49 = vld [vmem:[%s1607_s22 + $0xb8] sm:$0xff] }
  0x3f   : > { %1208 = vmatprep.subr.bf16.mxu0 %v1454_v11  ;;  %v384_v50 = vld [vmem:[%s1607_s22 + $0xc0] sm:$0xff]  ;;  %v385_v51 = vld [vmem:[%s1607_s22 + $0xc8] sm:$0xff]  ;;  %v386_v52 = vld [vmem:[%s1607_s22 + $0xd0] sm:$0xff] }
  0x40   : > { %499 = vperm.xlu1 %1290, %v364_v28   ;;  %504 = vperm.xlu0 %1289, %v365_v29   ;;  %v387_v53 = vld [vmem:[%s1607_s22 + $0xd8] sm:$0xff]  ;;  %v388_v54 = vld [vmem:[%s1607_s22 + $0xe0] sm:$0xff]  ;;  %v389_v55 = vld [vmem:[%s1607_s22 + $0xe8] sm:$0xff] }
  0x41   : > { %v390_v56 = vld [vmem:[%s1607_s22 + $0xf0] sm:$0xff]  ;;  %v391_v57 = vld [vmem:[%s1607_s22 + $0xf8] sm:$0xff]  ;;  %v918_v62 = vld [vmem:[%s2114_s4 + $0x20] sm:$0xff]  ;;  %s1357_s22 = scalar_lea.vmem %s2037_s20, 1024 }
  0x42   : > { %1210 = vmatpush3.bf16.msra.mxu0 %v1209_v30  ;;  %v917_v61 = vld [vmem:[%s2114_s4 + $0x18] sm:$0xff]  ;;  %v920_v0 = vld [vmem:[%s2114_s4 + $0x30] sm:$0xff]  ;;  %v978_v2 = vld [vmem:[%s2115_s5] sm:$0xff]  ;;  %p1358_p2 = scmp.ne.s32.totalorder %s2037_s20, %s1357_s22  ;;  %p1365_p6 = scmp.lt.s32.totalorder %s1363_s14, %s1357_s22 }
  0x43   : > { %v921_v1 = vld [vmem:[%s2114_s4 + $0x38] sm:$0xff]  ;;  %v979_v3 = vld [vmem:[%s2115_s5 + $0x8] sm:$0xff]  ;;  %v980_v4 = vld [vmem:[%s2115_s5 + $0x10] sm:$0xff] }
  0x44   : > { %509 = vperm.xlu1 %1290, %v366_v31   ;;  %514 = vperm.xlu0 %1289, %v367_v32   ;;  %v981_v5 = vld [vmem:[%s2115_s5 + $0x18] sm:$0xff]  ;;  %v982_v6 = vld [vmem:[%s2115_s5 + $0x20] sm:$0xff]  ;;  %v983_v7 = vld [vmem:[%s2115_s5 + $0x28] sm:$0xff]  ;;  %p1359_p3 = pnand %p1358_p2, %p1559_p8  ;;  %p1366_p7 = por %p1365_p6, %p1364_p5 }
  0x45   : > { %1197 = vmatmul.mubr.msk.f32.vlgmr.msra.gmra.mrb[0].mxu0 %vm403_vm1, %v392_v33  ;;  %v984_v8 = vld [vmem:[%s2115_s5 + $0x30] sm:$0xff]  ;;  %v985_v9 = vld [vmem:[%s2115_s5 + $0x38] sm:$0xff] }
  0x46   : > { %p1360_p4 = pneg %p1359_p3 }
  0x48   : > { %519 = vperm.xlu1 %1290, %v368_v34   ;;  %524 = vperm.xlu0 %1289, %v369_v35   ;;  %p1367_p10 = pnand %p1366_p7, %p1360_p4 }
  0x4c   : > { %529 = vperm.xlu1 %1290, %v370_v36   ;;  %534 = vperm.xlu0 %1289, %v371_v37  }
  0x50   : > { %539 = vperm.xlu1 %1290, %v372_v38   ;;  %544 = vperm.xlu0 %1289, %v373_v39   ;;  %v399_v39 = vlaneseq }
  0x54   : > { %549 = vperm.xlu1 %1290, %v374_v40   ;;  %554 = vperm.xlu0 %1289, %v375_v41   ;;  %v400_v40 = vshrl.u32 %v399_v39, 7 }
  0x58   : > { %559 = vperm.xlu1 %1290, %v376_v42   ;;  %564 = vperm.xlu0 %1289, %v377_v43   ;;  %v401_v43 = vsub.s32 0, %v400_v40 }
  0x5c   : > { %569 = vperm.xlu1 %1290, %v378_v44   ;;  %574 = vperm.xlu0 %1289, %v379_v45  }
  0x60   : > { %579 = vperm.xlu1 %1290, %v380_v46   ;;  %584 = vperm.xlu0 %1289, %v381_v47  }
  0x64   : > { %589 = vperm.xlu1 %1290, %v382_v48   ;;  %594 = vperm.xlu0 %1289, %v383_v49  }
  0x68   : > { %599 = vperm.xlu1 %1290, %v384_v50   ;;  %604 = vperm.xlu0 %1289, %v385_v51  }
  0x6c   : > { %609 = vperm.xlu1 %1290, %v386_v52   ;;  %614 = vperm.xlu0 %1289, %v387_v53  }
  0x70   : > { %619 = vperm.xlu1 %1290, %v388_v54   ;;  %624 = vperm.xlu0 %1289, %v389_v55  }
  0x74   : > { %629 = vperm.xlu1 %1290, %v390_v56   ;;  %634 = vperm.xlu0 %1289, %v391_v57  }
  0x78   : > { %924 = vperm.xlu1 %1290, %v914_v58   ;;  %929 = vperm.xlu0 %1289, %v915_v59  }
  0x7c   : > { %934 = vperm.xlu1 %1290, %v916_v60   ;;  %939 = vperm.xlu0 %1289, %v917_v61  }
  0x80   : > { %944 = vperm.xlu1 %1290, %v918_v62   ;;  %949 = vperm.xlu0 %1289, %v919_v63  }
  0x84   : > { %954 = vperm.xlu1 %1290, %v920_v0   ;;  %959 = vperm.xlu0 %1289, %v921_v1  }
  0x88   : > { %988 = vperm.xlu1 %1290, %v978_v2   ;;  %993 = vperm.xlu0 %1289, %v979_v3  }
  0x8c   : > { %998 = vperm.xlu1 %1290, %v980_v4   ;;  %1003 = vperm.xlu0 %1289, %v981_v5  }
  0x90   : > { %1008 = vperm.xlu1 %1290, %v982_v6   ;;  %1013 = vperm.xlu0 %1289, %v983_v7  }
  0x94   : > { %1018 = vperm.xlu1 %1290, %v984_v8   ;;  %1023 = vperm.xlu0 %1289, %v985_v9  }
  0xb1   : > { %v397_v10 = vpop.permute.xlu0 %396 }
  0xb2   : > { %v402_v46 = vrot.slane %v397_v10, %v401_v43 }
  0xb7   : > { %v1704_v11 = vpop.permute.xlu1 %484  ;;  %v1706_v14 = vpop.permute.xlu0 %479 }
  0xbb   : > { %v1708_v15 = vpop.permute.xlu1 %489  ;;  %v1710_v18 = vpop.permute.xlu0 %494 }
  0xbf   : > { %v1712_v21 = vpop.permute.xlu1 %499  ;;  %v1714_v22 = vpop.permute.xlu0 %504 }
  0xc3   : > { %v1716_v23 = vpop.permute.xlu1 %509  ;;  %v1718_v24 = vpop.permute.xlu0 %514 }
  0xc7   : > { %v1720_v25 = vpop.permute.xlu1 %519  ;;  %v1722_v28 = vpop.permute.xlu0 %524 }
  0xcb   : > { %v1724_v29 = vpop.permute.xlu1 %529  ;;  %v1726_v30 = vpop.permute.xlu0 %534 }
  0xcf   : > { %v1728_v31 = vpop.permute.xlu1 %539  ;;  %v1730_v32 = vpop.permute.xlu0 %544 }
  0xd0   : > { %2155 = vst [vmem:[#allocation15_spill] sm:$0xff] %v1730_v32 }
  0xd3   : > { %v1732_v33 = vpop.permute.xlu1 %549  ;;  %v1734_v34 = vpop.permute.xlu0 %554 }
  0xd4   : > { %2156 = vst [vmem:[#allocation16_spill] sm:$0xff] %v1732_v33  ;;  %2157 = vst [vmem:[#allocation17_spill] sm:$0xff] %v1734_v34 }
  0xd7   : > { %v1736_v35 = vpop.permute.xlu1 %559  ;;  %v1738_v36 = vpop.permute.xlu0 %564 }
  0xd8   : > { %2158 = vst [vmem:[#allocation18_spill] sm:$0xff] %v1736_v35  ;;  %2159 = vst [vmem:[#allocation19_spill] sm:$0xff] %v1738_v36 }
  0xdb   : > { %v1740_v37 = vpop.permute.xlu1 %569  ;;  %v1742_v38 = vpop.permute.xlu0 %574 }
  0xdc   : > { %2160 = vst [vmem:[#allocation20_spill] sm:$0xff] %v1740_v37  ;;  %2161 = vst [vmem:[#allocation21_spill] sm:$0xff] %v1742_v38 }
  0xdf   : > { %v1744_v41 = vpop.permute.xlu1 %579  ;;  %v1746_v42 = vpop.permute.xlu0 %584 }
  0xe0   : > { %2162 = vst [vmem:[#allocation22_spill] sm:$0xff] %v1744_v41  ;;  %2163 = vst [vmem:[#allocation23_spill] sm:$0xff] %v1746_v42 }
  0xe3   : > { %v1748_v44 = vpop.permute.xlu1 %589  ;;  %v1750_v45 = vpop.permute.xlu0 %594 }
  0xe4   : > { %2164 = vst [vmem:[#allocation24_spill] sm:$0xff] %v1748_v44  ;;  %2165 = vst [vmem:[#allocation25_spill] sm:$0xff] %v1750_v45 }
  0xe7   : > { %v1752_v50 = vpop.permute.xlu1 %599  ;;  %v1754_v51 = vpop.permute.xlu0 %604 }
  0xe8   : > { %2166 = vst [vmem:[#allocation26_spill] sm:$0xff] %v1752_v50  ;;  %2167 = vst [vmem:[#allocation27_spill] sm:$0xff] %v1754_v51 }
  0xeb   : > { %v1768_v57 = vpop.permute.xlu1 %609  ;;  %v1770_v58 = vpop.permute.xlu0 %614 }
  0xec   : > { %2168 = vst [vmem:[#allocation28_spill] sm:$0xff] %v1768_v57  ;;  %2169 = vst [vmem:[#allocation29_spill] sm:$0xff] %v1770_v58 }
  0xef   : > { %v1816_v39 = vpop.permute.xlu1 %619  ;;  %v1818_v40 = vpop.permute.xlu0 %624 }
  0xf0   : > { %2170 = vst [vmem:[#allocation30_spill] sm:$0xff] %v1816_v39  ;;  %2171 = vst [vmem:[#allocation31_spill] sm:$0xff] %v1818_v40 }
 0x118   : > { %v473_v47 = vpop.f32.mrb[0].mxu0 }
 0x119   : > { %v474_v48 = vadd.f32 %v473_v47, %v402_v46  ;;  %v1198_v49 = vpop.f32.mrb[1].mxu0 }
 0x11b   : > { %v640_v52 = vrot.slane %v474_v48, %v401_v43 }
 0x11d   : > { %v1757_v53 = vmul.f32 %v640_v52, %v1706_v14  ;;  %v1760_v54 = vmul.f32 %v640_v52, %v1704_v11  ;;  %v1763_v55 = vmul.f32 %v640_v52, %v1708_v15  ;;  %v1766_v56 = vmul.f32 %v640_v52, %v1710_v18 }
 0x11e   : > { %v1773_v59 = vmul.f32 %v640_v52, %v1712_v21  ;;  %v1776_v60 = vmul.f32 %v640_v52, %v1714_v22  ;;  %v1779_v61 = vmul.f32 %v640_v52, %v1716_v23  ;;  %v1782_v62 = vmul.f32 %v640_v52, %v1718_v24 }
 0x11f   : > { %v1785_v63 = vmul.f32 %v640_v52, %v1720_v25  ;;  %v1788_v0 = vmul.f32 %v640_v52, %v1722_v28  ;;  %v1791_v1 = vmul.f32 %v640_v52, %v1724_v29  ;;  %v1794_v2 = vmul.f32 %v640_v52, %v1726_v30 }
 0x120   : > { %v673_v3 = vmax.f32 %v1757_v53, %v1773_v59  ;;  %v674_v4 = vmax.f32 %v1760_v54, %v1776_v60  ;;  %v675_v5 = vmax.f32 %v1763_v55, %v1779_v61  ;;  %v676_v6 = vmax.f32 %v1766_v56, %v1782_v62 }
 0x121   : > { %v1805_v7 = vmul.f32 %v640_v52, %v1728_v31  ;;  %v1808_v8 = vmul.f32 %v640_v52, %v1730_v32  ;;  %v1811_v9 = vmul.f32 %v640_v52, %v1732_v33  ;;  %v1814_v10 = vmul.f32 %v640_v52, %v1734_v34 }
 0x122   : > { %v677_v43 = vmax.f32 %v673_v3, %v1785_v63  ;;  %v678_v46 = vmax.f32 %v674_v4, %v1788_v0  ;;  %v679_v47 = vmax.f32 %v675_v5, %v1791_v1  ;;  %v680_v48 = vmax.f32 %v676_v6, %v1794_v2 }
 0x123   : > { %v1825_v49 = vmul.f32 %v640_v52, %v1736_v35  ;;  %v1828_v27 = vmul.f32 %v640_v52, %v1738_v36  ;;  %v1831_v26 = vmul.f32 %v640_v52, %v1740_v37  ;;  %v1834_v20 = vmul.f32 %v640_v52, %v1742_v38 }
 0x124   : > { %v681_v3 = vmax.f32 %v677_v43, %v1805_v7  ;;  %v682_v4 = vmax.f32 %v678_v46, %v1808_v8  ;;  %v683_v5 = vmax.f32 %v679_v47, %v1811_v9  ;;  %v684_v6 = vmax.f32 %v680_v48, %v1814_v10 }
 0x125   : > { %v1841_v19 = vmul.f32 %v640_v52, %v1744_v41  ;;  %v1844_v17 = vmul.f32 %v640_v52, %v1746_v42  ;;  %v1847_v16 = vmul.f32 %v640_v52, %v1748_v44  ;;  %v1850_v13 = vmul.f32 %v640_v52, %v1750_v45  ;;  %v1868_v41 = vpop.permute.xlu1 %629 }
 0x126   : > { %v685_v43 = vmax.f32 %v681_v3, %v1825_v49  ;;  %v686_v46 = vmax.f32 %v682_v4, %v1828_v27  ;;  %v687_v47 = vmax.f32 %v683_v5, %v1831_v26  ;;  %v688_v48 = vmax.f32 %v684_v6, %v1834_v20  ;;  %2172 = vst [vmem:[#allocation32_spill] sm:$0xff] %v1868_v41  ;;  %v1870_v3 = vpop.permute.xlu0 %634 }
 0x127   : > { %v1857_v12 = vmul.f32 %v640_v52, %v1752_v50  ;;  %v1860_v42 = vmul.f32 %v640_v52, %v1754_v51  ;;  %v1863_v44 = vmul.f32 %v640_v52, %v1768_v57  ;;  %v1866_v45 = vmul.f32 %v640_v52, %v1770_v58  ;;  %2173 = vst [vmem:[#allocation33_spill] sm:$0xff] %v1870_v3 }
 0x128   : > { %v689_v4 = vmax.f32 %v685_v43, %v1841_v19  ;;  %v690_v5 = vmax.f32 %v686_v46, %v1844_v17  ;;  %v691_v6 = vmax.f32 %v687_v47, %v1847_v16  ;;  %v692_v50 = vmax.f32 %v688_v48, %v1850_v13 }
 0x129   : > { %v1877_v51 = vmul.f32 %v640_v52, %v1816_v39  ;;  %v1880_v57 = vmul.f32 %v640_v52, %v1818_v40  ;;  %v1883_v58 = vmul.f32 %v640_v52, %v1868_v41  ;;  %v1886_v38 = vmul.f32 %v640_v52, %v1870_v3 }
 0x12a   : > { %v693_v43 = vmax.f32 %v689_v4, %v1857_v12  ;;  %v694_v46 = vmax.f32 %v690_v5, %v1860_v42  ;;  %v695_v47 = vmax.f32 %v691_v6, %v1863_v44  ;;  %v696_v48 = vmax.f32 %v692_v50, %v1866_v45 }
 0x12c   : > { %v697_v39 = vmax.f32 %v693_v43, %v1877_v51  ;;  %v698_v37 = vmax.f32 %v694_v46, %v1880_v57  ;;  %v699_v40 = vmax.f32 %v695_v47, %v1883_v58  ;;  %v700_v41 = vmax.f32 %v696_v48, %v1886_v38 }
 0x12e   : > { %v701_v36 = vmax.f32 %v697_v39, %v698_v37  ;;  %v702_v35 = vmax.f32 %v699_v40, %v700_v41 }
 0x130   : > { %v703_v52 = vmax.f32 %v701_v36, %v702_v35 }
 0x132   : > { %v704_v3 = vrot.slane %v703_v52, 4 }
 0x134   : > { %v705_v34 = vmax.f32 %v703_v52, %v704_v3 }
 0x136   : > { %v706_v4 = vrot.slane %v705_v34, 2 }
 0x138   : > { %v707_v33 = vmax.f32 %v705_v34, %v706_v4 }
 0x13a   : > { %v708_v5 = vrot.slane %v707_v33, 1 }
 0x13c   : > { %v1896_v32 = vmax.f32 %v707_v33, %v708_v5 }
 0x13e   : > { %v710_v50 = vsub.f32 %v1757_v53, %v1896_v32  ;;  %v711_v6 = vsub.f32 %v1760_v54, %v1896_v32  ;;  %v712_v43 = vsub.f32 %v1763_v55, %v1896_v32  ;;  %v713_v37 = vsub.f32 %v1766_v56, %v1896_v32 }
 0x13f   : > { %v714_v35 = vsub.f32 %v1773_v59, %v1896_v32  ;;  %v732_v34 = vsub.f32 %v1847_v16, %v1896_v32  ;;  %v733_v33 = vsub.f32 %v1850_v13, %v1896_v32  ;;  %v734_v36 = vsub.f32 %v1857_v12, %v1896_v32 }
 0x140   : > { %v735_v41 = vsub.f32 %v1860_v42, %v1896_v32  ;;  %v736_v53 = vsub.f32 %v1863_v44, %v1896_v32  ;;  %v737_v54 = vsub.f32 %v1866_v45, %v1896_v32  ;;  %v738_v55 = vsub.f32 %v1877_v51, %v1896_v32 }
 0x141   : > { %v739_v56 = vsub.f32 %v1880_v57, %v1896_v32  ;;  %v741_v39 = vsub.f32 %v1886_v38, %v1896_v32  ;;  %v742_v40 = vmul.f32 1.442695, %v710_v50  ;;  %v744_v3 = vmul.f32 1.442695, %v711_v6 }
 0x142   : > { %v746_v46 = vmul.f32 1.442695, %v712_v43  ;;  %v715_v47 = vsub.f32 %v1776_v60, %v1896_v32  ;;  %v748_v48 = vmul.f32 1.442695, %v713_v37  ;;  %v716_v52 = vsub.f32 %v1779_v61, %v1896_v32 }
 0x143   : > { %1291 = vpow2.f32 %v742_v40  ;;  %v750_v4 = vmul.f32 1.442695, %v714_v35  ;;  %v717_v5 = vsub.f32 %v1782_v62, %v1896_v32  ;;  %v718_v50 = vsub.f32 %v1785_v63, %v1896_v32 }
 0x144   : > { %1293 = vpow2.f32 %v744_v3  ;;  %v752_v59 = vmul.f32 1.442695, %v715_v47  ;;  %v754_v6 = vmul.f32 1.442695, %v716_v52  ;;  %v719_v60 = vsub.f32 %v1788_v0, %v1896_v32 }
 0x145   : > { %1295 = vpow2.f32 %v746_v46  ;;  %v756_v43 = vmul.f32 1.442695, %v717_v5  ;;  %v720_v61 = vsub.f32 %v1791_v1, %v1896_v32  ;;  %v758_v37 = vmul.f32 1.442695, %v718_v50 }
 0x146   : > { %1297 = vpow2.f32 %v748_v48  ;;  %v721_v62 = vsub.f32 %v1794_v2, %v1896_v32  ;;  %v760_v3 = vmul.f32 1.442695, %v719_v60  ;;  %v722_v48 = vsub.f32 %v1805_v7, %v1896_v32 }
 0x147   : > { %1299 = vpow2.f32 %v750_v4  ;;  %v762_v1 = vmul.f32 1.442695, %v720_v61  ;;  %v723_v2 = vsub.f32 %v1808_v8, %v1896_v32  ;;  %v724_v7 = vsub.f32 %v1811_v9, %v1896_v32 }
 0x148   : > { %1301 = vpow2.f32 %v752_v59  ;;  %v766_v61 = vmul.f32 1.442695, %v722_v48  ;;  %v725_v8 = vsub.f32 %v1814_v10, %v1896_v32  ;;  %v726_v9 = vsub.f32 %v1825_v49, %v1896_v32 }
 0x149   : > { %1303 = vpow2.f32 %v754_v6  ;;  %v727_v10 = vsub.f32 %v1828_v27, %v1896_v32  ;;  %v728_v49 = vsub.f32 %v1831_v26, %v1896_v32  ;;  %v729_v27 = vsub.f32 %v1834_v20, %v1896_v32 }
 0x14a   : > { %1305 = vpow2.f32 %v756_v43  ;;  %v730_v26 = vsub.f32 %v1841_v19, %v1896_v32  ;;  %v731_v20 = vsub.f32 %v1844_v17, %v1896_v32  ;;  %v790_v16 = vmul.f32 1.442695, %v734_v36 }
 0x14b   : > { %1307 = vpow2.f32 %v758_v37  ;;  %v792_v13 = vmul.f32 1.442695, %v735_v41  ;;  %v794_v12 = vmul.f32 1.442695, %v736_v53  ;;  %v796_v42 = vmul.f32 1.442695, %v737_v54 }
 0x14c   : > { %1309 = vpow2.f32 %v760_v3  ;;  %v798_v44 = vmul.f32 1.442695, %v738_v55  ;;  %v800_v45 = vmul.f32 1.442695, %v739_v56  ;;  %v2183_v51 = vsub.f32 %v1883_v58, %v1896_v32  ;;  %v930_v32 = vpop.permute.xlu0 %929 }
 0x14d   : > { %v1292_v35 = vpop.eup %1291  ;;  %1311 = vpow2.f32 %v762_v1  ;;  %v772_v1 = vmul.f32 1.442695, %v725_v8  ;;  %v804_v57 = vmul.f32 1.442695, %v741_v39  ;;  %v2188_v39 = vld [vmem:[#allocation28_spill] sm:$0xff] }
 0x14e   : > { %v1294_v40 = vpop.eup %1293  ;;  %v843_v63 = vmul.f32 %v1292_v35, %v1706_v14  ;;  %v764_v14 = vmul.f32 1.442695, %v721_v62  ;;  %v768_v62 = vmul.f32 1.442695, %v723_v2  ;;  %v802_v55 = vmul.f32 1.442695, %v2183_v51 }
 0x14f   : > { %v1296_v46 = vpop.eup %1295  ;;  %v806_v47 = vadd.f32 %v1294_v40, %v1292_v35  ;;  %v844_v0 = vmul.f32 %v1294_v40, %v1704_v11 }
 0x150   : > { %v1298_v59 = vpop.eup %1297  ;;  %v845_v4 = vmul.f32 %v1296_v46, %v1708_v15  ;;  %1313 = vpow2.f32 %v764_v14 }
 0x151   : > { %v807_v52 = vadd.f32 %v1296_v46, %v806_v47  ;;  %v875_v5 = vadd.f32 %v844_v0, %v843_v63  ;;  %v1300_v50 = vpop.eup %1299  ;;  %v846_v60 = vmul.f32 %v1298_v59, %v1710_v18  ;;  %1315 = vpow2.f32 %v766_v61 }
 0x152   : > { %v1302_v43 = vpop.eup %1301  ;;  %v847_v15 = vmul.f32 %v1300_v50, %v1712_v21  ;;  %v770_v47 = vmul.f32 1.442695, %v724_v7  ;;  %1317 = vpow2.f32 %v768_v62  ;;  %v778_v61 = vmul.f32 1.442695, %v728_v49 }
 0x153   : > { %v808_v6 = vadd.f32 %v1298_v59, %v807_v52  ;;  %v876_v11 = vadd.f32 %v875_v5, %v845_v4  ;;  %v1304_v40 = vpop.eup %1303  ;;  %v848_v18 = vmul.f32 %v1302_v43, %v1714_v22 }
 0x154   : > { %v1306_v46 = vpop.eup %1305  ;;  %v849_v21 = vmul.f32 %v1304_v40, %v1716_v23  ;;  %1319 = vpow2.f32 %v770_v47 }
 0x155   : > { %v809_v37 = vadd.f32 %v1300_v50, %v808_v6  ;;  %v877_v35 = vadd.f32 %v876_v11, %v846_v60  ;;  %v1308_v48 = vpop.eup %1307  ;;  %v850_v22 = vmul.f32 %v1306_v46, %v1718_v24  ;;  %v774_v50 = vmul.f32 1.442695, %v726_v9 }
 0x156   : > { %v1310_v5 = vpop.eup %1309  ;;  %v851_v23 = vmul.f32 %v1308_v48, %v1720_v25  ;;  %1321 = vpow2.f32 %v772_v1  ;;  %v776_v60 = vmul.f32 1.442695, %v727_v10  ;;  %v2175_v10 = vld [vmem:[#allocation16_spill] sm:$0xff] }
 0x157   : > { %v810_v3 = vadd.f32 %v1302_v43, %v809_v37  ;;  %v878_v63 = vadd.f32 %v877_v35, %v847_v15  ;;  %v1312_v6 = vpop.eup %1311  ;;  %v852_v24 = vmul.f32 %v1310_v5, %v1722_v28  ;;  %1323 = vpow2.f32 %v774_v50 }
 0x158   : > { %v853_v25 = vmul.f32 %v1312_v6, %v1724_v29  ;;  %1325 = vpow2.f32 %v776_v60  ;;  %v784_v29 = vmul.f32 1.442695, %v731_v20  ;;  %v2178_v60 = vld [vmem:[#allocation19_spill] sm:$0xff] }
 0x159   : > { %v811_v0 = vadd.f32 %v1304_v40, %v810_v3  ;;  %v879_v59 = vadd.f32 %v878_v63, %v848_v18  ;;  %v780_v40 = vmul.f32 1.442695, %v729_v27  ;;  %1327 = vpow2.f32 %v778_v61 }
 0x15a   : > { %v1314_v7 = vpop.eup %1313  ;;  %v782_v18 = vmul.f32 1.442695, %v730_v26 }
 0x15b   : > { %v812_v52 = vadd.f32 %v1306_v46, %v811_v0  ;;  %v880_v4 = vadd.f32 %v879_v59, %v849_v21  ;;  %v1316_v35 = vpop.eup %1315  ;;  %v854_v28 = vmul.f32 %v1314_v7, %v1726_v30  ;;  %1329 = vpow2.f32 %v780_v40  ;;  %v2174_v0 = vld [vmem:[#allocation15_spill] sm:$0xff]  ;;  %v2181_v40 = vld [vmem:[#allocation22_spill] sm:$0xff] }
 0x15c   : > { %v1318_v3 = vpop.eup %1317  ;;  %v855_v63 = vmul.f32 %v1316_v35, %v1728_v31  ;;  %1331 = vpow2.f32 %v782_v18  ;;  %v786_v30 = vmul.f32 1.442695, %v732_v34  ;;  %v788_v31 = vmul.f32 1.442695, %v733_v33 }
 0x15d   : > { %v813_v2 = vadd.f32 %v1308_v48, %v812_v52  ;;  %v881_v14 = vadd.f32 %v880_v4, %v850_v22  ;;  %v856_v21 = vmul.f32 %v1318_v3, %v2174_v0  ;;  %1333 = vpow2.f32 %v784_v29 }
 0x15e   : > { %v1320_v9 = vpop.eup %1319  ;;  %1335 = vpow2.f32 %v786_v30 }
 0x15f   : > { %v814_v11 = vadd.f32 %v1310_v5, %v813_v2  ;;  %v882_v43 = vadd.f32 %v881_v14, %v851_v23  ;;  %v857_v1 = vmul.f32 %v1320_v9, %v2175_v10  ;;  %v2176_v5 = vld [vmem:[#allocation17_spill] sm:$0xff]  ;;  %v2177_v23 = vld [vmem:[#allocation18_spill] sm:$0xff]  ;;  %1337 = vpow2.f32 %v788_v31  ;;  %v2187_v31 = vld [vmem:[#allocation27_spill] sm:$0xff] }
 0x160   : > { %v1322_v59 = vpop.eup %1321  ;;  %1339 = vpow2.f32 %v790_v16  ;;  %v2186_v10 = vld [vmem:[#allocation26_spill] sm:$0xff] }
 0x161   : > { %v815_v37 = vadd.f32 %v1312_v6, %v814_v11  ;;  %v883_v15 = vadd.f32 %v882_v43, %v852_v24  ;;  %v1324_v22 = vpop.eup %1323  ;;  %v858_v49 = vmul.f32 %v1322_v59, %v2176_v5  ;;  %1341 = vpow2.f32 %v792_v13 }
 0x162   : > { %v1326_v2 = vpop.eup %1325  ;;  %v859_v14 = vmul.f32 %v1324_v22, %v2177_v23  ;;  %1343 = vpow2.f32 %v794_v12 }
 0x163   : > { %v816_v8 = vadd.f32 %v1314_v7, %v815_v37  ;;  %v884_v62 = vadd.f32 %v883_v15, %v853_v25  ;;  %v1328_v27 = vpop.eup %1327  ;;  %v860_v11 = vmul.f32 %v1326_v2, %v2178_v60  ;;  %v2179_v7 = vld [vmem:[#allocation20_spill] sm:$0xff]  ;;  %v2180_v25 = vld [vmem:[#allocation21_spill] sm:$0xff]  ;;  %1345 = vpow2.f32 %v796_v42  ;;  %v2190_v60 = vld [vmem:[#allocation30_spill] sm:$0xff] }
 0x164   : > { %v861_v26 = vmul.f32 %v1328_v27, %v2179_v7  ;;  %1347 = vpow2.f32 %v798_v44  ;;  %v2193_v44 = vld [vmem:[#allocation33_spill] sm:$0xff] }
 0x165   : > { %v817_v19 = vadd.f32 %v1316_v35, %v816_v8  ;;  %v885_v46 = vadd.f32 %v884_v62, %v854_v28  ;;  %v1330_v43 = vpop.eup %1329  ;;  %1349 = vpow2.f32 %v800_v45 }
 0x166   : > { %v1332_v37 = vpop.eup %1331  ;;  %v862_v15 = vmul.f32 %v1330_v43, %v2180_v25  ;;  %1351 = vpow2.f32 %v802_v55  ;;  %v2192_v25 = vld [vmem:[#allocation32_spill] sm:$0xff] }
 0x167   : > { %v818_v47 = vadd.f32 %v1318_v3, %v817_v19  ;;  %v886_v17 = vadd.f32 %v885_v46, %v855_v63  ;;  %v1334_v20 = vpop.eup %1333  ;;  %v863_v8 = vmul.f32 %v1332_v37, %v2181_v40  ;;  %v2182_v3 = vld [vmem:[#allocation23_spill] sm:$0xff]  ;;  %1353 = vpow2.f32 %v804_v57 }
 0x168   : > { %v1336_v62 = vpop.eup %1335  ;;  %v864_v18 = vmul.f32 %v1334_v20, %v2182_v3 }
 0x169   : > { %v819_v48 = vadd.f32 %v1320_v9, %v818_v47  ;;  %v887_v52 = vadd.f32 %v886_v17, %v856_v21  ;;  %v1338_v63 = vpop.eup %1337  ;;  %v2184_v9 = vld [vmem:[#allocation24_spill] sm:$0xff]  ;;  %v2185_v21 = vld [vmem:[#allocation25_spill] sm:$0xff] }
 0x16a   : > { %v865_v29 = vmul.f32 %v1336_v62, %v2184_v9  ;;  %v1340_v0 = vpop.eup %1339  ;;  %v866_v17 = vmul.f32 %v1338_v63, %v2185_v21 }
 0x16b   : > { %v820_v4 = vadd.f32 %v1322_v59, %v819_v48  ;;  %v888_v50 = vadd.f32 %v887_v52, %v857_v1  ;;  %v1342_v30 = vpop.eup %1341  ;;  %v867_v58 = vmul.f32 %v1340_v0, %v2186_v10 }
 0x16c   : > { %v1344_v52 = vpop.eup %1343 }
 0x16d   : > { %v821_v34 = vadd.f32 %v1324_v22, %v820_v4  ;;  %v889_v6 = vadd.f32 %v888_v50, %v858_v49  ;;  %v868_v4 = vmul.f32 %v1342_v30, %v2187_v31  ;;  %v1346_v49 = vpop.eup %1345  ;;  %v925_v50 = vpop.permute.xlu1 %924 }
 0x16f   : > { %v822_v33 = vadd.f32 %v1326_v2, %v821_v34  ;;  %v890_v24 = vadd.f32 %v889_v6, %v859_v14  ;;  %v869_v2 = vmul.f32 %v1344_v52, %v2188_v39  ;;  %v1348_v34 = vpop.eup %1347  ;;  %v2189_v14 = vld [vmem:[#allocation29_spill] sm:$0xff]  ;;  %v2194_v39 = vld [vmem:[#allocation7_spill] sm:$0xff] }
 0x170   : > { %v870_v6 = vmul.f32 %v1346_v49, %v2189_v14  ;;  %v1350_v13 = vpop.eup %1349 }
 0x171   : > { %v823_v36 = vadd.f32 %v1328_v27, %v822_v33  ;;  %v891_v61 = vadd.f32 %v890_v24, %v860_v11  ;;  %v871_v11 = vmul.f32 %v1348_v34, %v2190_v60  ;;  %v935_v12 = vpop.permute.xlu1 %934  ;;  %v2200_v60 = vld [vmem:[#allocation13_spill] sm:$0xff] }
 0x173   : > { %v824_v41 = vadd.f32 %v1330_v43, %v823_v36  ;;  %v892_v35 = vadd.f32 %v891_v61, %v861_v26  ;;  %v1352_v43 = vpop.eup %1351  ;;  %v940_v36 = vpop.permute.xlu0 %939  ;;  %v2191_v26 = vld [vmem:[#allocation31_spill] sm:$0xff] }
 0x174   : > { %v872_v61 = vmul.f32 %v1350_v13, %v2191_v26  ;;  %v1354_v42 = vpop.eup %1353 }
 0x175   : > { %v825_v53 = vadd.f32 %v1332_v37, %v824_v41  ;;  %v893_v28 = vadd.f32 %v892_v35, %v862_v15  ;;  %v873_v15 = vmul.f32 %v1352_v43, %v2192_v25 }
 0x177   : > { %v826_v54 = vadd.f32 %v1334_v20, %v825_v53  ;;  %v894_v19 = vadd.f32 %v893_v28, %v863_v8  ;;  %v874_v53 = vmul.f32 %v1354_v42, %v2193_v44  ;;  %v945_v8 = vpop.permute.xlu1 %944  ;;  %v950_v28 = vpop.permute.xlu0 %949 }
 0x179   : > { %v827_v46 = vadd.f32 %v1336_v62, %v826_v54  ;;  %v895_v47 = vadd.f32 %v894_v19, %v864_v18 }
 0x17b   : > { %v828_v56 = vadd.f32 %v1338_v63, %v827_v46  ;;  %v896_v59 = vadd.f32 %v895_v47, %v865_v29  ;;  %v955_v19 = vpop.permute.xlu1 %954  ;;  %v960_v63 = vpop.permute.xlu0 %959 }
 0x17d   : > { %v829_v48 = vadd.f32 %v1340_v0, %v828_v56  ;;  %v897_v1 = vadd.f32 %v896_v59, %v866_v17 }
 0x17f   : > { %v830_v22 = vadd.f32 %v1342_v30, %v829_v48  ;;  %v898_v5 = vadd.f32 %v897_v1, %v867_v58  ;;  %v989_v47 = vpop.permute.xlu1 %988  ;;  %v994_v0 = vpop.permute.xlu0 %993 }
 0x181   : > { %v831_v38 = vadd.f32 %v1344_v52, %v830_v22  ;;  %v899_v16 = vadd.f32 %v898_v5, %v868_v4 }
 0x183   : > { %v832_v23 = vadd.f32 %v1346_v49, %v831_v38  ;;  %v900_v27 = vadd.f32 %v899_v16, %v869_v2  ;;  %v999_v56 = vpop.permute.xlu1 %998  ;;  %v1004_v21 = vpop.permute.xlu0 %1003  ;;  %v2195_v16 = vld [vmem:[#allocation8_spill] sm:$0xff] }
 0x185   : > { %v833_v33 = vadd.f32 %v1348_v34, %v832_v23  ;;  %v901_v24 = vadd.f32 %v900_v27, %v870_v6  ;;  %v2196_v23 = vld [vmem:[#allocation9_spill] sm:$0xff]  ;;  %v2197_v6 = vld [vmem:[#allocation10_spill] sm:$0xff] }
 0x187   : > { %v834_v7 = vadd.f32 %v1350_v13, %v833_v33  ;;  %v902_v37 = vadd.f32 %v901_v24, %v871_v11  ;;  %v1009_v48 = vpop.permute.xlu1 %1008  ;;  %v1014_v10 = vpop.permute.xlu0 %1013  ;;  %v2198_v13 = vld [vmem:[#allocation11_spill] sm:$0xff]  ;;  %v2201_v24 = vld [vmem:[#allocation14_spill] sm:$0xff] }
 0x189   : > { %v835_v41 = vadd.f32 %v1352_v43, %v834_v7  ;;  %v903_v35 = vadd.f32 %v902_v37, %v872_v61 }
 0x18b   : > { %v836_v20 = vadd.f32 %v1354_v42, %v835_v41  ;;  %v904_v40 = vadd.f32 %v903_v35, %v873_v15 }
 0x18d   : > { %v837_v62 = vrot.slane %v836_v20, 4  ;;  %v905_v45 = vadd.f32 %v904_v40, %v874_v53 }
 0x18f   : > { %v838_v54 = vadd.f32 %v837_v62, %v836_v20  ;;  %v906_v3 = vrot.slane %v905_v45, 4 }
 0x191   : > { %v839_v18 = vrot.slane %v838_v54, 2  ;;  %v907_v51 = vadd.f32 %v906_v3, %v905_v45 }
 0x193   : > { %v840_v55 = vadd.f32 %v839_v18, %v838_v54  ;;  %v908_v9 = vrot.slane %v907_v51, 2 }
 0x195   : > { %v841_v46 = vrot.slane %v840_v55, 1  ;;  %v909_v57 = vadd.f32 %v908_v9, %v907_v51 }
 0x197   : > { %v842_v29 = vadd.f32 %v841_v46, %v840_v55  ;;  %v910_v17 = vrot.slane %v909_v57, 1 }
 0x199   : > { %1355 = vrcp.f32 %v842_v29  ;;  %v911_v59 = vadd.f32 %v910_v17, %v909_v57 }
 0x1a3   : > { %v1356_v30 = vpop.eup %1355 }
 0x1a4   : > { %v913_v58 = vmul.f32 %v1356_v30, %v911_v59 }
 0x1a6   : > { %v962_v1 = vmul.f32 %v925_v50, %v913_v58  ;;  %v963_v52 = vmul.f32 %v930_v32, %v913_v58  ;;  %v964_v22 = vmul.f32 %v935_v12, %v913_v58  ;;  %v965_v31 = vmul.f32 %v940_v36, %v913_v58  ;;  %v2199_v32 = vld [vmem:[#allocation12_spill] sm:$0xff]  ;;  %v1019_v12 = vpop.permute.xlu1 %1018  ;;  %v1024_v36 = vpop.permute.xlu0 %1023 }
 0x1a7   : > { %v966_v4 = vmul.f32 %v945_v8, %v913_v58  ;;  %v967_v5 = vmul.f32 %v950_v28, %v913_v58  ;;  %v968_v49 = vmul.f32 %v955_v19, %v913_v58  ;;  %v969_v38 = vmul.f32 %v960_v63, %v913_v58 }
 0x1a8   : > { %v970_v2 = vadd.f32 %v962_v1, %v2194_v39  ;;  %v971_v34 = vadd.f32 %v963_v52, %v2195_v16  ;;  %v972_v14 = vadd.f32 %v964_v22, %v2196_v23  ;;  %v973_v27 = vadd.f32 %v965_v31, %v2197_v6 }
 0x1a9   : > { %v974_v50 = vadd.f32 %v966_v4, %v2198_v13  ;;  %v975_v33 = vadd.f32 %v967_v5, %v2199_v32  ;;  %v976_v11 = vadd.f32 %v968_v49, %v2200_v60  ;;  %v977_v43 = vadd.f32 %v969_v38, %v2201_v24 }
 0x1aa   : > { %v1026_v7 = vadd.f32 %v989_v47, %v970_v2  ;;  %v1027_v26 = vadd.f32 %v994_v0, %v971_v34  ;;  %v1028_v61 = vadd.f32 %v999_v56, %v972_v14  ;;  %v1029_v37 = vadd.f32 %v1004_v21, %v973_v27 }
 0x1ab   : > { %v1030_v42 = vadd.f32 %v1009_v48, %v974_v50  ;;  %v1031_v41 = vadd.f32 %v1014_v10, %v975_v33  ;;  %v1032_v25 = vadd.f32 %v1019_v12, %v976_v11  ;;  %v1033_v15 = vadd.f32 %v1024_v36, %v977_v43 }
 0x1ac   : > { %1034 = vst [vmem:[%s2029_s19] sm:$0xff] %v1026_v7  ;;  %1035 = vst [vmem:[%s2029_s19 + $0x8] sm:$0xff] %v1027_v26 }
 0x1ad   : > { %1036 = vst [vmem:[%s2029_s19 + $0x10] sm:$0xff] %v1028_v61  ;;  %1037 = vst [vmem:[%s2029_s19 + $0x18] sm:$0xff] %v1029_v37 }
 0x1ae   : > { %1038 = vst [vmem:[%s2029_s19 + $0x20] sm:$0xff] %v1030_v42  ;;  %1039 = vst [vmem:[%s2029_s19 + $0x28] sm:$0xff] %v1031_v41 }
 0x1af   : > { %1040 = vst [vmem:[%s2029_s19 + $0x30] sm:$0xff] %v1032_v25  ;;  %1041 = vst [vmem:[%s2029_s19 + $0x38] sm:$0xff] %v1033_v15 }
 0x1b0   : > { %1370 = shalt.err (!%p1367_p10)
}
 0x1b1   : > { %s1371_s11 = scalar_lea.hbm %s2046_s21, 1024  ;;  %s1375_s19 = scalar_lea.hbm %s2116_s6, 4096 }
 0x1b2   : > { %p1372_p11 = scmp.ne.s32.totalorder %s2046_s21, %s1371_s11  ;;  %p1376_p0 = scmp.lt.u32.totalorder %s2046_s21, %s2116_s6 }
 0x1b3   : > { %p1377_p1 = scmp.lt.u32.totalorder %s1375_s19, %s1371_s11  ;;  %p1379_p3 = scmp.lt.u32.totalorder %s1371_s11, %s2046_s21 }
 0x1b4   : > { %p1373_p12 = pnand %p1372_p11, %p1559_p8 }
 0x1b5   : > { %p1378_p2 = por %p1377_p1, %p1376_p0 }
 0x1b6   : > { %p1374_p13 = pneg %p1373_p12 }
 0x1b7   : > { %p1380_p4 = por %p1379_p3, %p1378_p2 }
 0x1b9   : > { %p1381_p5 = pnand %p1380_p4, %p1374_p13 }
 0x1bb   : > { %1384 = shalt.err (!%p1381_p5)
}
 0x1bc   : > { %s1458_s15 = smov 128   ;;  %s1459_s22 = smov 256  }
 0x1bd   : > { %s1460_s7 = smov 8  }
 0x1be   : > { %1211 = dma.vmem_to_hbm [thread:$0]  (%p1559_p8), %s2037_s20, 1024, %s2046_s21, %s2058_s3, %s1458_s15, %s1459_s22, %s1460_s7  }
 0x1bf PF: > { %p1217_p6 = scmp.ge.s32.totalorder %s1451_s30, 2  ;;  %s1072_s10 = sand.u32 1, %s1423_s23  }
 0x1c0   : > { %s1073_s14 = scalar_lea.sflag [#allocation5], %s1072_s10 }
 0x1c1   : > { %p1214_p7 = pnand %p1217_p6, %p1563_p9 }
 0x1c3   : > { %1418 = dma.done.wait (!%p1214_p7), %s1073_s14, 1024  }
 0x1c4   : > { %1420 = vsyncadd (!%p1214_p7), %s1073_s14, 4294966272  ;;  %s21_s30 = sadd.s32 1, %s1451_s30   ;;  %s2202_s23 = smov %s1427_s24 }
 0x1c5   : > { %p18_p10 = scmp.ge.s32.totalorder %s21_s30, 6   ;;  %s2203_s24 = smov %s1431_s25 }
 0x1c6   : > { %s2204_s25 = smov %s1571_s17  ;;  %s2205_s26 = smov %s1443_s28 }
 0x1c7   : > { %s2206_s27 = smov %s1447_s29  ;;  %s2207_s28 = smov %s2210_s8 }
 0x1c8   : > { %s2208_s29 = smov %s2214_s9  ;;  %20 = sbr.rel (!%p18_p10) target bundleno = 8 (0x8), region = 125 }
 0x1cf   :  { %1078 = vsyncpa [#allocation5], 1 }
 0x1d0   :  { %1080 = vsyncpa [#allocation5 + $0x1], 1 }

</bundles_post_ra>
